<compile_context>
chip_gen: v6e
topology: v6e:2x2x1
jax: 0.10.0
libtpu: 0.0.40
codegen_flags: <defaults>
</compile_context>

<pallas_src>
import math
import jax
import jax.numpy as jnp
from jax.experimental import pallas as pl
from jax.experimental.pallas import tpu as pltpu

# ----- model hyper-parameters (small, consistent with the module) -----
B, S, D, H = 2, 8, 32, 4          # batch, sequence, d_model, heads
DK = D // H                       # per-head dim
NEG_INF = -1000000000.0           # matches masked_fill(-1e9)


# =======================  Pallas kernel  =======================

def mha_kernel(qkv_ref, bias_ref, w_ref, b_ref,      # inputs
               y_ref, attn_ref,                      # outputs
               ctx_scratch):                         # VMEM scratch
    """Full multi-headed attention for ALL batch elements (no grid)."""
    # Flatten (B, S, D) -> (B*S, D): each projection is ONE MXU matmul.
    xq = qkv_ref[0].reshape(B * S, D)
    xk = qkv_ref[1].reshape(B * S, D)
    xv = qkv_ref[2].reshape(B * S, D)

    scale = 1.0 / math.sqrt(DK)
    # Fold 1/sqrt(d_k) into q once (equivalent to scaling the scores).
    q = (jnp.dot(xq, w_ref[0], preferred_element_type=jnp.float32)
         + b_ref[0]) * scale
    k = jnp.dot(xk, w_ref[1], preferred_element_type=jnp.float32) + b_ref[1]
    v = jnp.dot(xv, w_ref[2], preferred_element_type=jnp.float32) + b_ref[2]

    q3 = q.reshape(B, S, D)
    k3 = k.reshape(B, S, D)
    v3 = v.reshape(B, S, D)
    mask_bias = bias_ref[...]                         # (B, 1, S): 0 / -1e9

    # Static per-head loop (H small); each iteration is batched over B.
    for hi in range(H):
        sl = slice(hi * DK, (hi + 1) * DK)
        qh = q3[:, :, sl]                             # (B, S, DK)
        kh = k3[:, :, sl]                             # (B, S, DK)
        vh = v3[:, :, sl]                             # (B, S, DK)

        # scores = qh @ kh^T, batched over B (one lowered dot_general).
        scores = jnp.einsum("bqd,bkd->bqk", qh, kh,
                            preferred_element_type=jnp.float32)   # (B, S, S)
        scores = scores + mask_bias                   # broadcast-add mask bias

        m = jnp.max(scores, axis=-1, keepdims=True)
        e = jnp.exp(scores - m)
        p = e / jnp.sum(e, axis=-1, keepdims=True)    # exact softmax

        # Write probabilities straight into the output block (no staging copy).
        for b in range(B):
            attn_ref[b, hi, :, :] = p[b]

        # Context for this head, batched over B; store into the concat layout.
        ctx_h = jnp.einsum("bqk,bkd->bqd", p, vh,
                           preferred_element_type=jnp.float32)    # (B, S, DK)
        ctx_scratch[:, sl] = ctx_h.reshape(B * S, DK)

    # One (B*S, D) @ (D, D) output projection.
    y = jnp.dot(ctx_scratch[...], w_ref[3],
                preferred_element_type=jnp.float32) + b_ref[3]
    y_ref[...] = y.reshape(B, S, D)


# =======================  wrapper  =======================

@jax.jit
def mha_forward(query, key, value, mask, params):
    """Reproduces MultiHeadedAttention.forward (eval mode, dropout=0).

    query/key/value: (B, S, D); mask: (B, 1, S) float (1 = keep, 0 = mask).
    Returns (output (B, S, D), attention probabilities (B, H, S, S)).
    """
    wq, bq, wk, bk, wv, bv, wo, bo = params
    qkv = jnp.stack([query, key, value])                        # (3, B, S, D)
    w_all = jnp.stack([wq, wk, wv, wo])                         # (4, D, D)
    b_all = jnp.stack([bq, bk, bv, bo])                         # (4, 1, D)
    # Additive mask bias: 0 where kept, -1e9 where mask == 0 (same semantics
    # as masked_fill(mask.eq(0), -1e9) after softmax).
    mask_bias = jnp.where(mask == 0.0, NEG_INF, 0.0).astype(jnp.float32)

    vmem = pl.BlockSpec(memory_space=pltpu.MemorySpace.VMEM)    # full array
    return pl.pallas_call(
        mha_kernel,
        out_shape=(jax.ShapeDtypeStruct((B, S, D), jnp.float32),
                   jax.ShapeDtypeStruct((B, H, S, S), jnp.float32)),
        in_specs=[vmem, vmem, vmem, vmem],
        out_specs=(vmem, vmem),
        scratch_shapes=[pltpu.VMEM((B * S, D), jnp.float32)],   # concat(ctx heads)
    )(qkv, mask_bias, w_all, b_all)


# =======================  pure-JAX reference (for validation)  =======================

def mha_reference(query, key, value, mask, params):
    wq, bq, wk, bk, wv, bv, wo, bo = params
    q = query @ wq + bq
    k = key @ wk + bk
    v = value @ wv + bv

    def split_heads(t):   # (B,S,D) -> (B,H,S,DK)
        return t.reshape(B, S, H, DK).transpose(0, 2, 1, 3)

    qh, kh, vh = split_heads(q), split_heads(k), split_heads(v)
    scores = jnp.einsum("bhqd,bhkd->bhqk", qh, kh) / math.sqrt(DK)
    m4 = mask[:, :, None, :]                      # (B,1,1,S), broadcast over h & q
    scores = jnp.where(m4 == 0.0, NEG_INF, scores)
    p = jax.nn.softmax(scores, axis=-1)
    ctx = jnp.einsum("bhqk,bhkd->bhqd", p, vh)
    ctx = ctx.transpose(0, 2, 1, 3).reshape(B, S, D)
    return ctx @ wo + bo, p


# =======================  deterministic parameter init  =======================

def init_params(key):
    keys = jax.random.split(key, 8)
    wq = 0.1 * jax.random.normal(keys[0], (D, D), jnp.float32)
    wk = 0.1 * jax.random.normal(keys[1], (D, D), jnp.float32)
    wv = 0.1 * jax.random.normal(keys[2], (D, D), jnp.float32)
    wo = 0.1 * jax.random.normal(keys[3], (D, D), jnp.float32)
    bq = 0.1 * jax.random.normal(keys[4], (1, D), jnp.float32)
    bk = 0.1 * jax.random.normal(keys[5], (1, D), jnp.float32)
    bv = 0.1 * jax.random.normal(keys[6], (1, D), jnp.float32)
    bo = 0.1 * jax.random.normal(keys[7], (1, D), jnp.float32)
    return [wq, bq, wk, bk, wv, bv, wo, bo]


# =======================  main  =======================

if __name__ == "__main__":
    key = jax.random.PRNGKey(0)
    k_x, k_p = jax.random.split(key)
    x = jax.random.normal(k_x, (B, S, D), jnp.float32)
    # (B, 1, S) key-padding mask: batch 1 has its last two positions masked out.
    mask = jnp.ones((B, 1, S), jnp.float32).at[1, 0, 6:].set(0.0)
    params = init_params(k_p)

    # Self-attention: query = key = value = x (module supports distinct inputs).
    y, attn = mha_forward(x, x, x, mask, params)
    y = jax.block_until_ready(y)
    attn = jax.block_until_ready(attn)

    assert y.shape == (B, S, D) and attn.shape == (B, H, S, S)
    assert bool(jnp.all(jnp.isfinite(y))) and bool(jnp.all(jnp.isfinite(attn)))

    # Validate against the pure-JAX reference (tight tol: exact softmax now).
    y_ref, attn_ref = mha_reference(x, x, x, mask, params)
    assert bool(jnp.allclose(attn, attn_ref, atol=1e-4, rtol=1e-4))
    assert bool(jnp.allclose(y, y_ref, atol=1e-4, rtol=1e-4))
    # Softmax rows sum to ~1 and masked keys get ~0 probability.
    assert bool(jnp.allclose(jnp.sum(attn, axis=-1), 1.0, atol=1e-5))
    assert bool(jnp.all(attn[1, :, :, 6:] < 1e-6))

    print("KERNEL_OK")
</pallas_src>

<mosaic_0001>
module attributes {stable_mosaic.version = 11 : i64} {
  func.func @mha_kernel(%arg0: memref<3x2x8x32xf32, #tpu.memory_space<vmem>>, %arg1: memref<2x1x8xf32, #tpu.memory_space<vmem>>, %arg2: memref<4x32x32xf32, #tpu.memory_space<vmem>>, %arg3: memref<4x1x32xf32, #tpu.memory_space<vmem>>, %arg4: memref<2x8x32xf32, #tpu.memory_space<vmem>>, %arg5: memref<2x4x8x8xf32, #tpu.memory_space<vmem>>, %arg6: memref<16x32xf32, #tpu.memory_space<vmem>>) attributes {dimension_semantics = [], scalar_prefetch = 0 : i64, scratch_operands = 1 : i64, tpu.core_type = #tpu.core_type<tc>} {
    %c0 = arith.constant 0 : index
    %c0_0 = arith.constant 0 : index
    %c0_1 = arith.constant 0 : index
    %c0_2 = arith.constant 0 : index
    %0 = vector.load %arg0[%c0, %c0_0, %c0_1, %c0_2] : memref<3x2x8x32xf32, #tpu.memory_space<vmem>>, vector<1x2x8x32xf32>
    %1 = vector.shape_cast %0 : vector<1x2x8x32xf32> to vector<2x8x32xf32>
    %2 = vector.shape_cast %1 : vector<2x8x32xf32> to vector<16x32xf32>
    %c1 = arith.constant 1 : index
    %c0_3 = arith.constant 0 : index
    %c0_4 = arith.constant 0 : index
    %c0_5 = arith.constant 0 : index
    %3 = vector.load %arg0[%c1, %c0_3, %c0_4, %c0_5] : memref<3x2x8x32xf32, #tpu.memory_space<vmem>>, vector<1x2x8x32xf32>
    %4 = vector.shape_cast %3 : vector<1x2x8x32xf32> to vector<2x8x32xf32>
    %5 = vector.shape_cast %4 : vector<2x8x32xf32> to vector<16x32xf32>
    %c2 = arith.constant 2 : index
    %c0_6 = arith.constant 0 : index
    %c0_7 = arith.constant 0 : index
    %c0_8 = arith.constant 0 : index
    %6 = vector.load %arg0[%c2, %c0_6, %c0_7, %c0_8] : memref<3x2x8x32xf32, #tpu.memory_space<vmem>>, vector<1x2x8x32xf32>
    %7 = vector.shape_cast %6 : vector<1x2x8x32xf32> to vector<2x8x32xf32>
    %8 = vector.shape_cast %7 : vector<2x8x32xf32> to vector<16x32xf32>
    %c0_9 = arith.constant 0 : index
    %c0_10 = arith.constant 0 : index
    %c0_11 = arith.constant 0 : index
    %9 = vector.load %arg2[%c0_9, %c0_10, %c0_11] : memref<4x32x32xf32, #tpu.memory_space<vmem>>, vector<1x32x32xf32>
    %10 = vector.shape_cast %9 : vector<1x32x32xf32> to vector<32x32xf32>
    %cst = arith.constant dense<0.000000e+00> : vector<16x32xf32>
    %11 = tpu.matmul %2, %10, %cst {dimension_numbers = #tpu.dot_dimension_numbers<[1], [0], [0], [1], [0, 0, 1, 1], [], []>} : vector<16x32xf32>, vector<32x32xf32>, vector<16x32xf32> -> vector<16x32xf32>
    %c0_12 = arith.constant 0 : index
    %c0_13 = arith.constant 0 : index
    %c0_14 = arith.constant 0 : index
    %12 = vector.load %arg3[%c0_12, %c0_13, %c0_14] : memref<4x1x32xf32, #tpu.memory_space<vmem>>, vector<1x1x32xf32>
    %13 = vector.shape_cast %12 : vector<1x1x32xf32> to vector<1x32xf32>
    %14 = vector.broadcast %13 : vector<1x32xf32> to vector<16x32xf32>
    %15 = arith.addf %11, %14 : vector<16x32xf32>
    %cst_15 = arith.constant 0.353553385 : f32
    %16 = vector.broadcast %cst_15 : f32 to vector<16x32xf32>
    %17 = arith.mulf %15, %16 : vector<16x32xf32>
    %c1_16 = arith.constant 1 : index
    %c0_17 = arith.constant 0 : index
    %c0_18 = arith.constant 0 : index
    %18 = vector.load %arg2[%c1_16, %c0_17, %c0_18] : memref<4x32x32xf32, #tpu.memory_space<vmem>>, vector<1x32x32xf32>
    %19 = vector.shape_cast %18 : vector<1x32x32xf32> to vector<32x32xf32>
    %cst_19 = arith.constant dense<0.000000e+00> : vector<16x32xf32>
    %20 = tpu.matmul %5, %19, %cst_19 {dimension_numbers = #tpu.dot_dimension_numbers<[1], [0], [0], [1], [0, 0, 1, 1], [], []>} : vector<16x32xf32>, vector<32x32xf32>, vector<16x32xf32> -> vector<16x32xf32>
    %c1_20 = arith.constant 1 : index
    %c0_21 = arith.constant 0 : index
    %c0_22 = arith.constant 0 : index
    %21 = vector.load %arg3[%c1_20, %c0_21, %c0_22] : memref<4x1x32xf32, #tpu.memory_space<vmem>>, vector<1x1x32xf32>
    %22 = vector.shape_cast %21 : vector<1x1x32xf32> to vector<1x32xf32>
    %23 = vector.broadcast %22 : vector<1x32xf32> to vector<16x32xf32>
    %24 = arith.addf %20, %23 : vector<16x32xf32>
    %c2_23 = arith.constant 2 : index
    %c0_24 = arith.constant 0 : index
    %c0_25 = arith.constant 0 : index
    %25 = vector.load %arg2[%c2_23, %c0_24, %c0_25] : memref<4x32x32xf32, #tpu.memory_space<vmem>>, vector<1x32x32xf32>
    %26 = vector.shape_cast %25 : vector<1x32x32xf32> to vector<32x32xf32>
    %cst_26 = arith.constant dense<0.000000e+00> : vector<16x32xf32>
    %27 = tpu.matmul %8, %26, %cst_26 {dimension_numbers = #tpu.dot_dimension_numbers<[1], [0], [0], [1], [0, 0, 1, 1], [], []>} : vector<16x32xf32>, vector<32x32xf32>, vector<16x32xf32> -> vector<16x32xf32>
    %c2_27 = arith.constant 2 : index
    %c0_28 = arith.constant 0 : index
    %c0_29 = arith.constant 0 : index
    %28 = vector.load %arg3[%c2_27, %c0_28, %c0_29] : memref<4x1x32xf32, #tpu.memory_space<vmem>>, vector<1x1x32xf32>
    %29 = vector.shape_cast %28 : vector<1x1x32xf32> to vector<1x32xf32>
    %30 = vector.broadcast %29 : vector<1x32xf32> to vector<16x32xf32>
    %31 = arith.addf %27, %30 : vector<16x32xf32>
    %32 = vector.shape_cast %17 : vector<16x32xf32> to vector<2x8x32xf32>
    %33 = vector.shape_cast %24 : vector<16x32xf32> to vector<2x8x32xf32>
    %34 = vector.shape_cast %31 : vector<16x32xf32> to vector<2x8x32xf32>
    %c0_30 = arith.constant 0 : index
    %c0_31 = arith.constant 0 : index
    %c0_32 = arith.constant 0 : index
    %35 = vector.load %arg1[%c0_30, %c0_31, %c0_32] : memref<2x1x8xf32, #tpu.memory_space<vmem>>, vector<2x1x8xf32>
    %36 = vector.extract_strided_slice %32 {offsets = [0, 0, 0], sizes = [2, 8, 8], strides = [1, 1, 1]} : vector<2x8x32xf32> to vector<2x8x8xf32>
    %37 = vector.extract_strided_slice %33 {offsets = [0, 0, 0], sizes = [2, 8, 8], strides = [1, 1, 1]} : vector<2x8x32xf32> to vector<2x8x8xf32>
    %38 = vector.extract_strided_slice %34 {offsets = [0, 0, 0], sizes = [2, 8, 8], strides = [1, 1, 1]} : vector<2x8x32xf32> to vector<2x8x8xf32>
    "tpu.trace_start"() <{level = 10 : i32, message = "bqd,bkd->bqk"}> : () -> ()
    %cst_33 = arith.constant dense<0.000000e+00> : vector<2x8x8xf32>
    %39 = tpu.matmul %36, %37, %cst_33 {dimension_numbers = #tpu.dot_dimension_numbers<[2], [2], [1], [1], [0, 0, 0, 1, 1, 1], [0], [0]>} : vector<2x8x8xf32>, vector<2x8x8xf32>, vector<2x8x8xf32> -> vector<2x8x8xf32>
    "tpu.trace_stop"() : () -> ()
    %40 = vector.broadcast %35 : vector<2x1x8xf32> to vector<2x8x8xf32>
    %41 = arith.addf %39, %40 : vector<2x8x8xf32>
    %cst_34 = arith.constant dense<0xFF800000> : vector<2x8xf32>
    %42 = vector.multi_reduction <maximumf>, %41, %cst_34 [2] : vector<2x8x8xf32> to vector<2x8xf32>
    %43 = vector.shape_cast %42 : vector<2x8xf32> to vector<2x8x1xf32>
    %44 = vector.broadcast %43 : vector<2x8x1xf32> to vector<2x8x8xf32>
    %45 = arith.subf %41, %44 : vector<2x8x8xf32>
    %46 = math.exp %45 : vector<2x8x8xf32>
    %cst_35 = arith.constant dense<0.000000e+00> : vector<2x8xf32>
    %47 = vector.multi_reduction <add>, %46, %cst_35 [2] : vector<2x8x8xf32> to vector<2x8xf32>
    %48 = vector.shape_cast %47 : vector<2x8xf32> to vector<2x8x1xf32>
    %49 = vector.broadcast %48 : vector<2x8x1xf32> to vector<2x8x8xf32>
    %50 = arith.divf %46, %49 : vector<2x8x8xf32>
    %51 = vector.extract_strided_slice %50 {offsets = [0, 0, 0], sizes = [1, 8, 8], strides = [1, 1, 1]} : vector<2x8x8xf32> to vector<1x8x8xf32>
    %52 = vector.shape_cast %51 : vector<1x8x8xf32> to vector<8x8xf32>
    %c0_36 = arith.constant 0 : index
    %c0_37 = arith.constant 0 : index
    %c0_38 = arith.constant 0 : index
    %c0_39 = arith.constant 0 : index
    %53 = vector.load %arg5[%c0_36, %c0_37, %c0_38, %c0_39] : memref<2x4x8x8xf32, #tpu.memory_space<vmem>>, vector<1x1x8x8xf32>
    %54 = vector.shape_cast %53 : vector<1x1x8x8xf32> to vector<8x8xf32>
    %55 = vector.shape_cast %52 : vector<8x8xf32> to vector<1x1x8x8xf32>
    tpu.vector_store %arg5[%c0_36, %c0_37, %c0_38, %c0_39], %55 {strides = array<i32>} : memref<2x4x8x8xf32, #tpu.memory_space<vmem>>, vector<1x1x8x8xf32>,
    %56 = vector.extract_strided_slice %50 {offsets = [1, 0, 0], sizes = [1, 8, 8], strides = [1, 1, 1]} : vector<2x8x8xf32> to vector<1x8x8xf32>
    %57 = vector.shape_cast %56 : vector<1x8x8xf32> to vector<8x8xf32>
    %c1_40 = arith.constant 1 : index
    %c0_41 = arith.constant 0 : index
    %c0_42 = arith.constant 0 : index
    %c0_43 = arith.constant 0 : index
    %58 = vector.load %arg5[%c1_40, %c0_41, %c0_42, %c0_43] : memref<2x4x8x8xf32, #tpu.memory_space<vmem>>, vector<1x1x8x8xf32>
    %59 = vector.shape_cast %58 : vector<1x1x8x8xf32> to vector<8x8xf32>
    %60 = vector.shape_cast %57 : vector<8x8xf32> to vector<1x1x8x8xf32>
    tpu.vector_store %arg5[%c1_40, %c0_41, %c0_42, %c0_43], %60 {strides = array<i32>} : memref<2x4x8x8xf32, #tpu.memory_space<vmem>>, vector<1x1x8x8xf32>,
    "tpu.trace_start"() <{level = 10 : i32, message = "bqk,bkd->bqd"}> : () -> ()
    %cst_44 = arith.constant dense<0.000000e+00> : vector<2x8x8xf32>
    %61 = tpu.matmul %50, %38, %cst_44 {dimension_numbers = #tpu.dot_dimension_numbers<[2], [1], [1], [2], [0, 0, 0, 1, 1, 2], [0], [0]>} : vector<2x8x8xf32>, vector<2x8x8xf32>, vector<2x8x8xf32> -> vector<2x8x8xf32>
    "tpu.trace_stop"() : () -> ()
    %62 = vector.shape_cast %61 : vector<2x8x8xf32> to vector<16x8xf32>
    %c0_45 = arith.constant 0 : index
    %c0_46 = arith.constant 0 : index
    %63 = vector.load %arg6[%c0_45, %c0_46] : memref<16x32xf32, #tpu.memory_space<vmem>>, vector<16x8xf32>
    tpu.vector_store %arg6[%c0_45, %c0_46], %62 {strides = array<i32>} : memref<16x32xf32, #tpu.memory_space<vmem>>, vector<16x8xf32>,
    %64 = vector.extract_strided_slice %32 {offsets = [0, 0, 8], sizes = [2, 8, 8], strides = [1, 1, 1]} : vector<2x8x32xf32> to vector<2x8x8xf32>
    %65 = vector.extract_strided_slice %33 {offsets = [0, 0, 8], sizes = [2, 8, 8], strides = [1, 1, 1]} : vector<2x8x32xf32> to vector<2x8x8xf32>
    %66 = vector.extract_strided_slice %34 {offsets = [0, 0, 8], sizes = [2, 8, 8], strides = [1, 1, 1]} : vector<2x8x32xf32> to vector<2x8x8xf32>
    "tpu.trace_start"() <{level = 10 : i32, message = "bqd,bkd->bqk"}> : () -> ()
    %cst_47 = arith.constant dense<0.000000e+00> : vector<2x8x8xf32>
    %67 = tpu.matmul %64, %65, %cst_47 {dimension_numbers = #tpu.dot_dimension_numbers<[2], [2], [1], [1], [0, 0, 0, 1, 1, 1], [0], [0]>} : vector<2x8x8xf32>, vector<2x8x8xf32>, vector<2x8x8xf32> -> vector<2x8x8xf32>
    "tpu.trace_stop"() : () -> ()
    %68 = vector.broadcast %35 : vector<2x1x8xf32> to vector<2x8x8xf32>
    %69 = arith.addf %67, %68 : vector<2x8x8xf32>
    %cst_48 = arith.constant dense<0xFF800000> : vector<2x8xf32>
    %70 = vector.multi_reduction <maximumf>, %69, %cst_48 [2] : vector<2x8x8xf32> to vector<2x8xf32>
    %71 = vector.shape_cast %70 : vector<2x8xf32> to vector<2x8x1xf32>
    %72 = vector.broadcast %71 : vector<2x8x1xf32> to vector<2x8x8xf32>
    %73 = arith.subf %69, %72 : vector<2x8x8xf32>
    %74 = math.exp %73 : vector<2x8x8xf32>
    %cst_49 = arith.constant dense<0.000000e+00> : vector<2x8xf32>
    %75 = vector.multi_reduction <add>, %74, %cst_49 [2] : vector<2x8x8xf32> to vector<2x8xf32>
    %76 = vector.shape_cast %75 : vector<2x8xf32> to vector<2x8x1xf32>
    %77 = vector.broadcast %76 : vector<2x8x1xf32> to vector<2x8x8xf32>
    %78 = arith.divf %74, %77 : vector<2x8x8xf32>
    %79 = vector.extract_strided_slice %78 {offsets = [0, 0, 0], sizes = [1, 8, 8], strides = [1, 1, 1]} : vector<2x8x8xf32> to vector<1x8x8xf32>
    %80 = vector.shape_cast %79 : vector<1x8x8xf32> to vector<8x8xf32>
    %c0_50 = arith.constant 0 : index
    %c1_51 = arith.constant 1 : index
    %c0_52 = arith.constant 0 : index
    %c0_53 = arith.constant 0 : index
    %81 = vector.load %arg5[%c0_50, %c1_51, %c0_52, %c0_53] : memref<2x4x8x8xf32, #tpu.memory_space<vmem>>, vector<1x1x8x8xf32>
    %82 = vector.shape_cast %81 : vector<1x1x8x8xf32> to vector<8x8xf32>
    %83 = vector.shape_cast %80 : vector<8x8xf32> to vector<1x1x8x8xf32>
    tpu.vector_store %arg5[%c0_50, %c1_51, %c0_52, %c0_53], %83 {strides = array<i32>} : memref<2x4x8x8xf32, #tpu.memory_space<vmem>>, vector<1x1x8x8xf32>,
    %84 = vector.extract_strided_slice %78 {offsets = [1, 0, 0], sizes = [1, 8, 8], strides = [1, 1, 1]} : vector<2x8x8xf32> to vector<1x8x8xf32>
    %85 = vector.shape_cast %84 : vector<1x8x8xf32> to vector<8x8xf32>
    %c1_54 = arith.constant 1 : index
    %c1_55 = arith.constant 1 : index
    %c0_56 = arith.constant 0 : index
    %c0_57 = arith.constant 0 : index
    %86 = vector.load %arg5[%c1_54, %c1_55, %c0_56, %c0_57] : memref<2x4x8x8xf32, #tpu.memory_space<vmem>>, vector<1x1x8x8xf32>
    %87 = vector.shape_cast %86 : vector<1x1x8x8xf32> to vector<8x8xf32>
    %88 = vector.shape_cast %85 : vector<8x8xf32> to vector<1x1x8x8xf32>
    tpu.vector_store %arg5[%c1_54, %c1_55, %c0_56, %c0_57], %88 {strides = array<i32>} : memref<2x4x8x8xf32, #tpu.memory_space<vmem>>, vector<1x1x8x8xf32>,
    "tpu.trace_start"() <{level = 10 : i32, message = "bqk,bkd->bqd"}> : () -> ()
    %cst_58 = arith.constant dense<0.000000e+00> : vector<2x8x8xf32>
    %89 = tpu.matmul %78, %66, %cst_58 {dimension_numbers = #tpu.dot_dimension_numbers<[2], [1], [1], [2], [0, 0, 0, 1, 1, 2], [0], [0]>} : vector<2x8x8xf32>, vector<2x8x8xf32>, vector<2x8x8xf32> -> vector<2x8x8xf32>
    "tpu.trace_stop"() : () -> ()
    %90 = vector.shape_cast %89 : vector<2x8x8xf32> to vector<16x8xf32>
    %c0_59 = arith.constant 0 : index
    %c8 = arith.constant 8 : index
    %91 = vector.load %arg6[%c0_59, %c8] : memref<16x32xf32, #tpu.memory_space<vmem>>, vector<16x8xf32>
    tpu.vector_store %arg6[%c0_59, %c8], %90 {strides = array<i32>} : memref<16x32xf32, #tpu.memory_space<vmem>>, vector<16x8xf32>,
    %92 = vector.extract_strided_slice %32 {offsets = [0, 0, 16], sizes = [2, 8, 8], strides = [1, 1, 1]} : vector<2x8x32xf32> to vector<2x8x8xf32>
    %93 = vector.extract_strided_slice %33 {offsets = [0, 0, 16], sizes = [2, 8, 8], strides = [1, 1, 1]} : vector<2x8x32xf32> to vector<2x8x8xf32>
    %94 = vector.extract_strided_slice %34 {offsets = [0, 0, 16], sizes = [2, 8, 8], strides = [1, 1, 1]} : vector<2x8x32xf32> to vector<2x8x8xf32>
    "tpu.trace_start"() <{level = 10 : i32, message = "bqd,bkd->bqk"}> : () -> ()
    %cst_60 = arith.constant dense<0.000000e+00> : vector<2x8x8xf32>
    %95 = tpu.matmul %92, %93, %cst_60 {dimension_numbers = #tpu.dot_dimension_numbers<[2], [2], [1], [1], [0, 0, 0, 1, 1, 1], [0], [0]>} : vector<2x8x8xf32>, vector<2x8x8xf32>, vector<2x8x8xf32> -> vector<2x8x8xf32>
    "tpu.trace_stop"() : () -> ()
    %96 = vector.broadcast %35 : vector<2x1x8xf32> to vector<2x8x8xf32>
    %97 = arith.addf %95, %96 : vector<2x8x8xf32>
    %cst_61 = arith.constant dense<0xFF800000> : vector<2x8xf32>
    %98 = vector.multi_reduction <maximumf>, %97, %cst_61 [2] : vector<2x8x8xf32> to vector<2x8xf32>
    %99 = vector.shape_cast %98 : vector<2x8xf32> to vector<2x8x1xf32>
    %100 = vector.broadcast %99 : vector<2x8x1xf32> to vector<2x8x8xf32>
    %101 = arith.subf %97, %100 : vector<2x8x8xf32>
    %102 = math.exp %101 : vector<2x8x8xf32>
    %cst_62 = arith.constant dense<0.000000e+00> : vector<2x8xf32>
    %103 = vector.multi_reduction <add>, %102, %cst_62 [2] : vector<2x8x8xf32> to vector<2x8xf32>
    %104 = vector.shape_cast %103 : vector<2x8xf32> to vector<2x8x1xf32>
    %105 = vector.broadcast %104 : vector<2x8x1xf32> to vector<2x8x8xf32>
    %106 = arith.divf %102, %105 : vector<2x8x8xf32>
    %107 = vector.extract_strided_slice %106 {offsets = [0, 0, 0], sizes = [1, 8, 8], strides = [1, 1, 1]} : vector<2x8x8xf32> to vector<1x8x8xf32>
    %108 = vector.shape_cast %107 : vector<1x8x8xf32> to vector<8x8xf32>
    %c0_63 = arith.constant 0 : index
    %c2_64 = arith.constant 2 : index
    %c0_65 = arith.constant 0 : index
    %c0_66 = arith.constant 0 : index
    %109 = vector.load %arg5[%c0_63, %c2_64, %c0_65, %c0_66] : memref<2x4x8x8xf32, #tpu.memory_space<vmem>>, vector<1x1x8x8xf32>
    %110 = vector.shape_cast %109 : vector<1x1x8x8xf32> to vector<8x8xf32>
    %111 = vector.shape_cast %108 : vector<8x8xf32> to vector<1x1x8x8xf32>
    tpu.vector_store %arg5[%c0_63, %c2_64, %c0_65, %c0_66], %111 {strides = array<i32>} : memref<2x4x8x8xf32, #tpu.memory_space<vmem>>, vector<1x1x8x8xf32>,
    %112 = vector.extract_strided_slice %106 {offsets = [1, 0, 0], sizes = [1, 8, 8], strides = [1, 1, 1]} : vector<2x8x8xf32> to vector<1x8x8xf32>
    %113 = vector.shape_cast %112 : vector<1x8x8xf32> to vector<8x8xf32>
    %c1_67 = arith.constant 1 : index
    %c2_68 = arith.constant 2 : index
    %c0_69 = arith.constant 0 : index
    %c0_70 = arith.constant 0 : index
    %114 = vector.load %arg5[%c1_67, %c2_68, %c0_69, %c0_70] : memref<2x4x8x8xf32, #tpu.memory_space<vmem>>, vector<1x1x8x8xf32>
    %115 = vector.shape_cast %114 : vector<1x1x8x8xf32> to vector<8x8xf32>
    %116 = vector.shape_cast %113 : vector<8x8xf32> to vector<1x1x8x8xf32>
    tpu.vector_store %arg5[%c1_67, %c2_68, %c0_69, %c0_70], %116 {strides = array<i32>} : memref<2x4x8x8xf32, #tpu.memory_space<vmem>>, vector<1x1x8x8xf32>,
    "tpu.trace_start"() <{level = 10 : i32, message = "bqk,bkd->bqd"}> : () -> ()
    %cst_71 = arith.constant dense<0.000000e+00> : vector<2x8x8xf32>
    %117 = tpu.matmul %106, %94, %cst_71 {dimension_numbers = #tpu.dot_dimension_numbers<[2], [1], [1], [2], [0, 0, 0, 1, 1, 2], [0], [0]>} : vector<2x8x8xf32>, vector<2x8x8xf32>, vector<2x8x8xf32> -> vector<2x8x8xf32>
    "tpu.trace_stop"() : () -> ()
    %118 = vector.shape_cast %117 : vector<2x8x8xf32> to vector<16x8xf32>
    %c0_72 = arith.constant 0 : index
    %c16 = arith.constant 16 : index
    %119 = vector.load %arg6[%c0_72, %c16] : memref<16x32xf32, #tpu.memory_space<vmem>>, vector<16x8xf32>
    tpu.vector_store %arg6[%c0_72, %c16], %118 {strides = array<i32>} : memref<16x32xf32, #tpu.memory_space<vmem>>, vector<16x8xf32>,
    %120 = vector.extract_strided_slice %32 {offsets = [0, 0, 24], sizes = [2, 8, 8], strides = [1, 1, 1]} : vector<2x8x32xf32> to vector<2x8x8xf32>
    %121 = vector.extract_strided_slice %33 {offsets = [0, 0, 24], sizes = [2, 8, 8], strides = [1, 1, 1]} : vector<2x8x32xf32> to vector<2x8x8xf32>
    %122 = vector.extract_strided_slice %34 {offsets = [0, 0, 24], sizes = [2, 8, 8], strides = [1, 1, 1]} : vector<2x8x32xf32> to vector<2x8x8xf32>
    "tpu.trace_start"() <{level = 10 : i32, message = "bqd,bkd->bqk"}> : () -> ()
    %cst_73 = arith.constant dense<0.000000e+00> : vector<2x8x8xf32>
    %123 = tpu.matmul %120, %121, %cst_73 {dimension_numbers = #tpu.dot_dimension_numbers<[2], [2], [1], [1], [0, 0, 0, 1, 1, 1], [0], [0]>} : vector<2x8x8xf32>, vector<2x8x8xf32>, vector<2x8x8xf32> -> vector<2x8x8xf32>
    "tpu.trace_stop"() : () -> ()
    %124 = vector.broadcast %35 : vector<2x1x8xf32> to vector<2x8x8xf32>
    %125 = arith.addf %123, %124 : vector<2x8x8xf32>
    %cst_74 = arith.constant dense<0xFF800000> : vector<2x8xf32>
    %126 = vector.multi_reduction <maximumf>, %125, %cst_74 [2] : vector<2x8x8xf32> to vector<2x8xf32>
    %127 = vector.shape_cast %126 : vector<2x8xf32> to vector<2x8x1xf32>
    %128 = vector.broadcast %127 : vector<2x8x1xf32> to vector<2x8x8xf32>
    %129 = arith.subf %125, %128 : vector<2x8x8xf32>
    %130 = math.exp %129 : vector<2x8x8xf32>
    %cst_75 = arith.constant dense<0.000000e+00> : vector<2x8xf32>
    %131 = vector.multi_reduction <add>, %130, %cst_75 [2] : vector<2x8x8xf32> to vector<2x8xf32>
    %132 = vector.shape_cast %131 : vector<2x8xf32> to vector<2x8x1xf32>
    %133 = vector.broadcast %132 : vector<2x8x1xf32> to vector<2x8x8xf32>
    %134 = arith.divf %130, %133 : vector<2x8x8xf32>
    %135 = vector.extract_strided_slice %134 {offsets = [0, 0, 0], sizes = [1, 8, 8], strides = [1, 1, 1]} : vector<2x8x8xf32> to vector<1x8x8xf32>
    %136 = vector.shape_cast %135 : vector<1x8x8xf32> to vector<8x8xf32>
    %c0_76 = arith.constant 0 : index
    %c3 = arith.constant 3 : index
    %c0_77 = arith.constant 0 : index
    %c0_78 = arith.constant 0 : index
    %137 = vector.load %arg5[%c0_76, %c3, %c0_77, %c0_78] : memref<2x4x8x8xf32, #tpu.memory_space<vmem>>, vector<1x1x8x8xf32>
    %138 = vector.shape_cast %137 : vector<1x1x8x8xf32> to vector<8x8xf32>
    %139 = vector.shape_cast %136 : vector<8x8xf32> to vector<1x1x8x8xf32>
    tpu.vector_store %arg5[%c0_76, %c3, %c0_77, %c0_78], %139 {strides = array<i32>} : memref<2x4x8x8xf32, #tpu.memory_space<vmem>>, vector<1x1x8x8xf32>,
    %140 = vector.extract_strided_slice %134 {offsets = [1, 0, 0], sizes = [1, 8, 8], strides = [1, 1, 1]} : vector<2x8x8xf32> to vector<1x8x8xf32>
    %141 = vector.shape_cast %140 : vector<1x8x8xf32> to vector<8x8xf32>
    %c1_79 = arith.constant 1 : index
    %c3_80 = arith.constant 3 : index
    %c0_81 = arith.constant 0 : index
    %c0_82 = arith.constant 0 : index
    %142 = vector.load %arg5[%c1_79, %c3_80, %c0_81, %c0_82] : memref<2x4x8x8xf32, #tpu.memory_space<vmem>>, vector<1x1x8x8xf32>
    %143 = vector.shape_cast %142 : vector<1x1x8x8xf32> to vector<8x8xf32>
    %144 = vector.shape_cast %141 : vector<8x8xf32> to vector<1x1x8x8xf32>
    tpu.vector_store %arg5[%c1_79, %c3_80, %c0_81, %c0_82], %144 {strides = array<i32>} : memref<2x4x8x8xf32, #tpu.memory_space<vmem>>, vector<1x1x8x8xf32>,
    "tpu.trace_start"() <{level = 10 : i32, message = "bqk,bkd->bqd"}> : () -> ()
    %cst_83 = arith.constant dense<0.000000e+00> : vector<2x8x8xf32>
    %145 = tpu.matmul %134, %122, %cst_83 {dimension_numbers = #tpu.dot_dimension_numbers<[2], [1], [1], [2], [0, 0, 0, 1, 1, 2], [0], [0]>} : vector<2x8x8xf32>, vector<2x8x8xf32>, vector<2x8x8xf32> -> vector<2x8x8xf32>
    "tpu.trace_stop"() : () -> ()
    %146 = vector.shape_cast %145 : vector<2x8x8xf32> to vector<16x8xf32>
    %c0_84 = arith.constant 0 : index
    %c24 = arith.constant 24 : index
    %147 = vector.load %arg6[%c0_84, %c24] : memref<16x32xf32, #tpu.memory_space<vmem>>, vector<16x8xf32>
    tpu.vector_store %arg6[%c0_84, %c24], %146 {strides = array<i32>} : memref<16x32xf32, #tpu.memory_space<vmem>>, vector<16x8xf32>,
    %c0_85 = arith.constant 0 : index
    %c0_86 = arith.constant 0 : index
    %148 = vector.load %arg6[%c0_85, %c0_86] : memref<16x32xf32, #tpu.memory_space<vmem>>, vector<16x32xf32>
    %c3_87 = arith.constant 3 : index
    %c0_88 = arith.constant 0 : index
    %c0_89 = arith.constant 0 : index
    %149 = vector.load %arg2[%c3_87, %c0_88, %c0_89] : memref<4x32x32xf32, #tpu.memory_space<vmem>>, vector<1x32x32xf32>
    %150 = vector.shape_cast %149 : vector<1x32x32xf32> to vector<32x32xf32>
    %cst_90 = arith.constant dense<0.000000e+00> : vector<16x32xf32>
    %151 = tpu.matmul %148, %150, %cst_90 {dimension_numbers = #tpu.dot_dimension_numbers<[1], [0], [0], [1], [0, 0, 1, 1], [], []>} : vector<16x32xf32>, vector<32x32xf32>, vector<16x32xf32> -> vector<16x32xf32>
    %c3_91 = arith.constant 3 : index
    %c0_92 = arith.constant 0 : index
    %c0_93 = arith.constant 0 : index
    %152 = vector.load %arg3[%c3_91, %c0_92, %c0_93] : memref<4x1x32xf32, #tpu.memory_space<vmem>>, vector<1x1x32xf32>
    %153 = vector.shape_cast %152 : vector<1x1x32xf32> to vector<1x32xf32>
    %154 = vector.broadcast %153 : vector<1x32xf32> to vector<16x32xf32>
    %155 = arith.addf %151, %154 : vector<16x32xf32>
    %156 = vector.shape_cast %155 : vector<16x32xf32> to vector<2x8x32xf32>
    %c0_94 = arith.constant 0 : index
    %c0_95 = arith.constant 0 : index
    %c0_96 = arith.constant 0 : index
    %157 = vector.load %arg4[%c0_94, %c0_95, %c0_96] : memref<2x8x32xf32, #tpu.memory_space<vmem>>, vector<2x8x32xf32>
    tpu.vector_store %arg4[%c0_94, %c0_95, %c0_96], %156 {strides = array<i32>} : memref<2x8x32xf32, #tpu.memory_space<vmem>>, vector<2x8x32xf32>,
    return
  }
}

</mosaic_0001>

<bundles_post_ra>
// kernel: mha_forward.1
= control target key start
LH: loop header
LB: loop body
LE: loop exit
PB: predicated region body
PF: predicated region fallthrough
CT: control target
= control target key end

     0   :  { %11 = vsyncpa [#allocation4], 0  ;;  %s2460_s0 = inlined_call_operand.vmem [shape: f32[3,2,8,32], index: 0, kind: input, shape index: {}]   ;;  %s2461_s1 = inlined_call_operand.vmem [shape: f32[2,1,8], index: 1, kind: input, shape index: {}]   ;;  %s2462_s2 = inlined_call_operand.vmem [shape: f32[4,32,32], index: 2, kind: input, shape index: {}]   ;;  %s2463_s3 = inlined_call_operand.vmem [shape: f32[4,1,32], index: 3, kind: input, shape index: {}]   ;;  %s2464_s4 = inlined_call_operand.hbm [shape: f32[2,8,32], index: 4, kind: output, shape index: {0}]   ;;  %s2465_s5 = inlined_call_operand.hbm [shape: f32[2,4,8,8], index: 5, kind: output, shape index: {1}]  }
   0x1   :  { %v32_v0 = vld [vmem:[%s2462_s2 + $0x18] sm:$0xff]  ;;  %v31_v2 = vld [vmem:[%s2462_s2 + $0x10] sm:$0xff]  ;;  %v30_v4 = vld [vmem:[%s2462_s2 + $0x8] sm:$0xff] }
   0x2   :  { %v1829_v1 = vld [vmem:[%s2462_s2 + $0x38] sm:$0xff]  ;;  %1932 = vmatprep.subr.mxu0 %v32_v0  ;;  %v1828_v3 = vld [vmem:[%s2462_s2 + $0x30] sm:$0xff]  ;;  %v1827_v5 = vld [vmem:[%s2462_s2 + $0x28] sm:$0xff] }
   0x3   :  { %1943 = vmatprep.subr.mxu1 %v1829_v1  ;;  %1933 = vmatpush3.msra.mxu0 %v32_v0  ;;  %v29_v6 = vld [vmem:[%s2462_s2] sm:$0xff] }
   0x4   :  { %1944 = vmatpush3.msra.mxu1 %v1829_v1  ;;  %1934 = vmatprep.subr.mxu0 %v31_v2  ;;  %v1826_v7 = vld [vmem:[%s2462_s2 + $0x20] sm:$0xff] }
   0x5   :  { %1945 = vmatprep.subr.mxu1 %v1828_v3  ;;  %1935 = vmatpush3.msra.mxu0 %v31_v2 }
   0x6   :  { %1946 = vmatpush3.msra.mxu1 %v1828_v3 }
   0x7   :  { %12 = vsyncpa [#allocation6], 0  ;;  %1936 = vmatprep.subr.mxu0 %v30_v4  ;;  %1947 = vmatprep.subr.mxu1 %v1827_v5  ;;  %v21_v8 = vld [vmem:[%s2460_s0] sm:$0xff]  ;;  %vm40_vm0 = vcmask 261120   ;;  %v1819_v9 = vld [vmem:[%s2460_s0 + $0x10] sm:$0xff]  ;;  %v2143_v12 = vmov 0.0  }
   0x8   :  { %1937 = vmatpush3.msra.mxu0 %v30_v4  ;;  %1948 = vmatpush3.msra.mxu1 %v1827_v5  ;;  %v22_v10 = vld [vmem:[%s2460_s0 + $0x8] sm:$0xff]  ;;  %v1820_v11 = vld [vmem:[%s2460_s0 + $0x18] sm:$0xff]  ;;  %vm2144_vm1 = vmmov 0   ;;  %v1831_v13 = vld [vmem:[%s2463_s3 + $0x1] ss:$0 sm:$0xff]  ;;  %vm326_vm2 = vcmask 64512  }
   0x9   :  { %1938 = vmatprep.subr.mxu0 %v29_v6  ;;  %1949 = vmatprep.subr.mxu1 %v1826_v7  ;;  %v1823_v15 = vld [vmem:[%s2463_s3] ss:$0 sm:$0xff]  ;;  %s2145_s21 = smov 120   ;;  %v1837_v25 = vld [vmem:[%s2462_s2 + $0x58] sm:$0xff]  ;;  %v1836_v26 = vld [vmem:[%s2462_s2 + $0x50] sm:$0xff]  ;;  %s2146_s13 = smov 112  }
   0xa   :  { %1939 = vmatpush3.msra.mxu0 %v29_v6  ;;  %1940 = vmatprep.mubr.msk.f32.mxu0 %vm40_vm0, %v21_v8  ;;  %v1821_v27 = vld [vmem:[%s2460_s0 + $0x20] sm:$0xff]  ;;  %v1835_v28 = vld [vmem:[%s2462_s2 + $0x48] sm:$0xff]  ;;  %s2147_s14 = smov 104   ;;  %s2148_s15 = smov 8   ;;  %vm996_vm3 = vcmask 130112   ;;  %vm1341_vm4 = vcmask 195712  }
   0xb   :  { %1950 = vmatpush3.msra.mxu1 %v1826_v7  ;;  %1951 = vmatprep.mubr.msk.f32.mxu1 %vm40_vm0, %v1819_v9  ;;  %v1834_v29 = vld [vmem:[%s2462_s2 + $0x40] sm:$0xff]  ;;  %v1822_v30 = vld [vmem:[%s2460_s0 + $0x28] sm:$0xff]  ;;  %s2149_s16 = smov 16   ;;  %vm1686_vm5 = vcmask 261312   ;;  %s2151_s26 = smov [#allocation5]  }
   0xc   :  { %1941 = vmatmul.mubr.msk.f32.vlgmr.msra.gmra.mxu0 %vm40_vm0, %v22_v10  ;;  %1952 = vmatmul.mubr.msk.f32.vlgmr.msra.gmra.mxu1 %vm40_vm0, %v1820_v11  ;;  %v2285_v31 = vld [vmem:[%s2461_s1] ss:$0 sm:$0xff]  ;;  %v2291_v35 = vld [vmem:[%s2461_s1 + $0x1] ss:$0 sm:$0xff]  ;;  %v1839_v55 = vld [vmem:[%s2463_s3 + $0x2] ss:$0 sm:$0xff] }
   0xd   :  { %1965 = vmatprep.subr.mxu1 %v2143_v12  ;;  %1967 = vmatprep.mubr.msk.f32.mxu1 %vm2144_vm1, %v2143_v12 }
   0xe   :  { %1954 = vmatprep.subr.mxu0 %v1837_v25  ;;  %1962 = vmatprep.mubr.msk.f32.mxu0 %vm40_vm0, %v1821_v27 }
   0xf   :  { %1955 = vmatpush3.msra.mxu0 %v1837_v25 }
  0x10   :  { %1956 = vmatprep.subr.mxu0 %v1836_v26 }
  0x11   :  { %1957 = vmatpush3.msra.mxu0 %v1836_v26 }
  0x12   :  { %1958 = vmatprep.subr.mxu0 %v1835_v28 }
  0x13   :  { %1959 = vmatpush3.msra.mxu0 %v1835_v28 }
  0x14   :  { %1960 = vmatprep.subr.mxu0 %v1834_v29 }
  0x15   :  { %1961 = vmatpush3.msra.mxu0 %v1834_v29 }
  0x16   :  { %1963 = vmatmul.mubr.msk.f32.vlgmr.msra.gmra.mxu0 %vm40_vm0, %v1822_v30  ;;  %1985 = vmatprep.subr.mxu0 %v2143_v12 }
  0x17   :  { %1987 = vmatprep.mubr.msk.f32.mxu0 %vm2144_vm1, %v2143_v12 }
  0xcc   :  { %v1942_v14 = vpop.f32.mrf.mxu0  ;;  %v1953_v16 = vpop.f32.mrf.mxu1 }
  0xcd   :  { %v2233_v17 = vadd.f32 %v1953_v16, %v1831_v13  ;;  %v119_v23 = vadd.f32 %v1942_v14, %v1823_v15 }
  0xce   :  { %v113_v18 = vpop.f32.mrf.mxu0  ;;  %v209_v19 = vpop.f32.mrf.mxu1 }
  0xcf   :  { %v114_v20 = vadd.f32 %v1823_v15, %v113_v18  ;;  %v2235_v21 = vadd.f32 %v1831_v13, %v209_v19  ;;  %732 = vrot.lane.b32.xlu1 %v2233_v17, %s2145_s21  ;;  %v2252_v24 = vmul.f32 0.35355338, %v119_v23 }
  0xd1   :  { %v2239_v22 = vmul.f32 0.35355338, %v114_v20  ;;  %1966 = vmatpush3.xpose.msk.msra.mxu1 %vm326_vm2, %v2235_v21 }
  0xd2   :  { %1970 = vmatprep.subr.mxu1 %v2143_v12 }
  0xd3   :  { %652 = vrot.lane.b32.xlu1 %v2239_v22, %s2145_s21 }
  0xd4   :  { %1968 = vmatmul.mubr.msk.f32.vlgmr.msra.gmra.mxu1 %vm326_vm2, %v2239_v22 }
  0xd5   :  { %1971 = vmatpush3.xpose.msk.msra.mxu1 %vm326_vm2, %v2233_v17  ;;  %1972 = vmatprep.mubr.msk.f32.mxu1 %vm2144_vm1, %v2143_v12 }
  0xd6   :  { %1975 = vmatprep.subr.mxu1 %v2143_v12  ;;  %v1964_v54 = vpop.f32.mrf.mxu0 }
  0xd7   :  { %v2308_v56 = vadd.f32 %v1964_v54, %v1839_v55 }
  0xd8   :  { %1973 = vmatmul.mubr.msk.f32.vlgmr.msra.gmra.mxu1 %vm326_vm2, %v2252_v24  ;;  %v303_v57 = vpop.f32.mrf.mxu0 }
  0xd9   :  { %1977 = vmatprep.mubr.msk.f32.mxu1 %vm2144_vm1, %v2143_v12  ;;  %v2310_v58 = vadd.f32 %v1839_v55, %v303_v57 }
  0xdb   :  { %1976 = vmatpush3.msra.mxu1 %v2310_v58 }
  0xdc   :  { %1980 = vmatprep.subr.mxu1 %v2143_v12 }
 0x141   :  { %v733_v45 = vpop.permute.xlu1 %732 }
 0x145   :  { %v653_v49 = vpop.permute.xlu1 %652 }
 0x194   :  { %v399_v32 = vpop.f32.mrf.mxu1 }
 0x195   :  { %v400_v33 = vadd.f32 %v2285_v31, %v399_v32 }
 0x196   :  { %v1969_v34 = vpop.f32.mrf.mxu1 }
 0x197   :  { %v479_v36 = vsel %vm326_vm2, %v400_v33, -inf }
 0x198   :  { %480 = vmax.xlane.f32.xlu0 %v479_v36  ;;  %v475_v37 = vpop.f32.mrf.mxu1 }
 0x199   :  { %v476_v38 = vadd.f32 %v2291_v35, %v475_v37 }
 0x19a   :  { %v1974_v39 = vpop.f32.mrf.mxu1 }
 0x19b   :  { %v482_v40 = vsel %vm326_vm2, %v476_v38, -inf }
 0x19c   :  { %483 = vmax.xlane.f32.xlu0 %v482_v40 }
 0x1b2   :  { %654 = vrot.lane.b32.xlu0 %v2235_v21, %s2145_s21 }
 0x221   :  { %v481_v41 = vpop.xlane.xlu0 %480 }
 0x222   :  { %v485_v42 = vsub.f32 %v400_v33, %v481_v41 }
 0x224   :  { %v487_v43 = vmul.f32 1.442695, %v485_v42 }
 0x225   :  { %v484_v44 = vpop.xlane.xlu0 %483 }
 0x226   :  { %2067 = vpow2.f32 %v487_v43  ;;  %v486_v46 = vsub.f32 %v476_v38, %v484_v44 }
 0x228   :  { %v489_v47 = vmul.f32 1.442695, %v486_v46 }
 0x229   :  { %v655_v48 = vpop.permute.xlu0 %654 }
 0x22a   :  { %2069 = vpow2.f32 %v489_v47  ;;  %1986 = vmatpush3.xpose.msk.msra.mxu0 %vm326_vm2, %v655_v48 }
 0x22b   :  { %1995 = vmatprep.subr.mxu0 %v2143_v12 }
 0x22d   :  { %1988 = vmatmul.mubr.msk.f32.vlgmr.msra.gmra.mxu0 %vm326_vm2, %v653_v49 }
 0x22e   :  { %1997 = vmatprep.mubr.msk.f32.mxu0 %vm2144_vm1, %v2143_v12 }
 0x233   :  { %v2068_v50 = vpop.eup %2067 }
 0x234   :  { %v491_v51 = vsel %vm326_vm2, %v2068_v50, 0.0 }
 0x235   :  { %492 = vadd.xlane.f32.xlu1 %v491_v51 }
 0x237   :  { %v2070_v52 = vpop.eup %2069 }
 0x238   :  { %v494_v53 = vsel %vm326_vm2, %v2070_v52, 0.0 }
 0x239   :  { %495 = vadd.xlane.f32.xlu1 %v494_v53 }
 0x24a   :  { %730 = vrot.lane.b32.xlu1 %v2252_v24, %s2145_s21 }
 0x2be   :  { %v493_v59 = vpop.xlane.xlu1 %492 }
 0x2bf   :  { %2071 = vrcp.f32 %v493_v59 }
 0x2c2   :  { %v496_v60 = vpop.xlane.xlu1 %495 }
 0x2c3   :  { %2073 = vrcp.f32 %v496_v60 }
 0x2c6   :  { %v731_v1 = vpop.permute.xlu1 %730 }
 0x2cc   :  { %v2072_v61 = vpop.eup %2071 }
 0x2cd   :  { %v498_v62 = vmul.f32 %v2072_v61, %v2068_v50 }
 0x2cf   :  { %501 = vst.msk [vmem:[#allocation5] sm:$0xff] %vm326_vm2, %v498_v62  ;;  %1978 = vmatmul.mubr.msk.f32.vlgmr.msra.gmra.mxu1 %vm326_vm2, %v498_v62 }
 0x2d0   :  { %v2074_v63 = vpop.eup %2073  ;;  %1981 = vmatpush3.msra.mxu1 %v2308_v56  ;;  %1982 = vmatprep.mubr.msk.f32.mxu1 %vm2144_vm1, %v2143_v12 }
 0x2d1   :  { %1990 = vmatprep.subr.mxu1 %v2143_v12  ;;  %v500_v0 = vmul.f32 %v2074_v63, %v2070_v52 }
 0x2d3   :  { %503 = vst.msk [vmem:[#allocation5 + $0x20] sm:$0xff] %vm326_vm2, %v500_v0  ;;  %1983 = vmatmul.mubr.msk.f32.vlgmr.msra.gmra.mxu1 %vm326_vm2, %v500_v0 }
 0x2d4   :  { %1991 = vmatpush3.xpose.msk.msra.mxu1 %vm326_vm2, %v733_v45  ;;  %1992 = vmatprep.mubr.msk.f32.mxu1 %vm2144_vm1, %v2143_v12 }
 0x2d5   :  { %2000 = vmatprep.subr.mxu1 %v2143_v12 }
 0x2d7   :  { %1993 = vmatmul.mubr.msk.f32.vlgmr.msra.gmra.mxu1 %vm326_vm2, %v731_v1 }
 0x2d8   :  { %2002 = vmatprep.mubr.msk.f32.mxu1 %vm2144_vm1, %v2143_v12 }
 0x2ed   :  { %v726_v2 = vpop.f32.mrf.mxu0 }
 0x2ee   :  { %v727_v3 = vadd.f32 %v2285_v31, %v726_v2 }
 0x2ef   :  { %v1989_v4 = vpop.f32.mrf.mxu0 }
 0x2f0   :  { %v808_v5 = vsel %vm326_vm2, %v727_v3, -inf }
 0x2f1   :  { %809 = vmax.xlane.f32.xlu0 %v808_v5 }
 0x37a   :  { %v810_v6 = vpop.xlane.xlu0 %809 }
 0x37b   :  { %v814_v7 = vsub.f32 %v727_v3, %v810_v6 }
 0x37d   :  { %v816_v8 = vmul.f32 1.442695, %v814_v7 }
 0x37f   :  { %2075 = vpow2.f32 %v816_v8 }
 0x38c   :  { %v2076_v9 = vpop.eup %2075 }
 0x38d   :  { %v820_v10 = vsel %vm326_vm2, %v2076_v9, 0.0 }
 0x38e   :  { %821 = vadd.xlane.f32.xlu0 %v820_v10 }
 0x38f   :  { %v573_v11 = vpop.f32.mrf.mxu1 }
 0x390   :  { %650 = vst.msk [vmem:[#allocation2] sm:$0xff] %vm326_vm2, %v573_v11 }
 0x391   :  { %v1979_v13 = vpop.f32.mrf.mxu1 }
 0x393   :  { %v646_v14 = vpop.f32.mrf.mxu1 }
 0x394   :  { %651 = vst.msk [vmem:[#allocation2 + $0x8] sm:$0xff] %vm326_vm2, %v646_v14 }
 0x395   :  { %v1984_v15 = vpop.f32.mrf.mxu1 }
 0x397   :  { %v804_v16 = vpop.f32.mrf.mxu1 }
 0x398   :  { %v805_v18 = vadd.f32 %v2291_v35, %v804_v16 }
 0x399   :  { %v1994_v19 = vpop.f32.mrf.mxu1 }
 0x39a   :  { %v811_v20 = vsel %vm326_vm2, %v805_v18, -inf }
 0x39b   :  { %812 = vmax.xlane.f32.xlu1 %v811_v20 }
 0x3a4   :  { %835 = vrot.lane.b32.xlu0 %v2310_v58, %s2145_s21 }
 0x3ac   :  { %912 = vrot.lane.b32.xlu1 %v2308_v56, %s2145_s21  ;;  %s2150_s21 = smov 24  }
 0x3b0   :  { %1001 = vrot.lane.b32.xlu1 %v2235_v21, %s2146_s13 }
 0x3b4   :  { %1079 = vrot.lane.b32.xlu1 %v2233_v17, %s2146_s13 }
 0x3b8   :  { %1077 = vrot.lane.b32.xlu1 %v2252_v24, %s2146_s13 }
 0x417   :  { %v822_v23 = vpop.xlane.xlu0 %821 }
 0x418   :  { %2077 = vrcp.f32 %v822_v23 }
 0x41b   :  { %v836_v25 = vpop.permute.xlu0 %835 }
 0x41c   :  { %1996 = vmatpush3.msra.mxu0 %v836_v25 }
 0x41d   :  { %2005 = vmatprep.subr.mxu0 %v2143_v12 }
 0x424   :  { %v813_v26 = vpop.xlane.xlu1 %812 }
 0x425   :  { %v2078_v27 = vpop.eup %2077  ;;  %v815_v28 = vsub.f32 %v805_v18, %v813_v26 }
 0x426   :  { %v827_v29 = vmul.f32 %v2078_v27, %v2076_v9 }
 0x427   :  { %v818_v30 = vmul.f32 1.442695, %v815_v28 }
 0x428   :  { %831 = vst.msk [vmem:[#allocation5 + $0x8] sm:$0xff] %vm326_vm2, %v827_v29  ;;  %1998 = vmatmul.mubr.msk.f32.vlgmr.msra.gmra.mxu0 %vm326_vm2, %v827_v29  ;;  %v913_v32 = vpop.permute.xlu1 %912 }
 0x429   :  { %2079 = vpow2.f32 %v818_v30  ;;  %2001 = vmatpush3.msra.mxu1 %v913_v32  ;;  %2007 = vmatprep.mubr.msk.f32.mxu0 %vm2144_vm1, %v2143_v12 }
 0x42a   :  { %2010 = vmatprep.subr.mxu1 %v2143_v12 }
 0x42c   :  { %v1002_v33 = vpop.permute.xlu1 %1001 }
 0x42d   :  { %2006 = vmatpush3.xpose.msk.msra.mxu0 %vm326_vm2, %v1002_v33 }
 0x42e   :  { %2015 = vmatprep.subr.mxu0 %v2143_v12 }
 0x430   :  { %v1080_v40 = vpop.permute.xlu1 %1079 }
 0x434   :  { %v1078_v42 = vpop.permute.xlu1 %1077 }
 0x436   :  { %v2080_v34 = vpop.eup %2079 }
 0x437   :  { %v823_v36 = vsel %vm326_vm2, %v2080_v34, 0.0 }
 0x438   :  { %824 = vadd.xlane.f32.xlu0 %v823_v36 }
 0x44e   :  { %999 = vrot.lane.b32.xlu0 %v2239_v22, %s2146_s13 }
 0x4c1   :  { %v825_v37 = vpop.xlane.xlu0 %824 }
 0x4c2   :  { %2081 = vrcp.f32 %v825_v37 }
 0x4c5   :  { %v1000_v38 = vpop.permute.xlu0 %999 }
 0x4c6   :  { %2008 = vmatmul.mubr.msk.f32.vlgmr.msra.gmra.mxu0 %vm326_vm2, %v1000_v38 }
 0x4c7   :  { %2017 = vmatprep.mubr.msk.f32.mxu0 %vm2144_vm1, %v2143_v12 }
 0x4cf   :  { %v2082_v39 = vpop.eup %2081 }
 0x4d0   :  { %v829_v41 = vmul.f32 %v2082_v39, %v2080_v34 }
 0x4d2   :  { %833 = vst.msk [vmem:[#allocation5 + $0x28] sm:$0xff] %vm326_vm2, %v829_v41  ;;  %2003 = vmatmul.mubr.msk.f32.vlgmr.msra.gmra.mxu1 %vm326_vm2, %v829_v41 }
 0x4d3   :  { %2011 = vmatpush3.xpose.msk.msra.mxu1 %vm326_vm2, %v1080_v40  ;;  %2012 = vmatprep.mubr.msk.f32.mxu1 %vm2144_vm1, %v2143_v12 }
 0x4d4   :  { %2020 = vmatprep.subr.mxu1 %v2143_v12 }
 0x4d6   :  { %2013 = vmatmul.mubr.msk.f32.vlgmr.msra.gmra.mxu1 %vm326_vm2, %v1078_v42 }
 0x4d7   :  { %2022 = vmatprep.mubr.msk.f32.mxu1 %vm2144_vm1, %v2143_v12 }
 0x4e8   :  { %v2371_v43 = vpop.f32.mrf.mxu0 }
 0x4ea   :  { %v1999_v44 = vpop.f32.mrf.mxu0 }
 0x586   :  { %v1073_v45 = vpop.f32.mrf.mxu0 }
 0x587   :  { %v1074_v46 = vadd.f32 %v2285_v31, %v1073_v45 }
 0x588   :  { %v2009_v47 = vpop.f32.mrf.mxu0 }
 0x589   :  { %v1155_v48 = vsel %vm326_vm2, %v1074_v46, -inf }
 0x58a   :  { %1156 = vmax.xlane.f32.xlu0 %v1155_v48  ;;  %v1870_v48 = vld [vmem:[%s2462_s2 + $0x70] sm:$0xff] }
 0x592   :  { %v2375_v49 = vpop.f32.mrf.mxu1 }
 0x594   :  { %v2004_v50 = vpop.f32.mrf.mxu1 }
 0x595   :  { %v1869_v50 = vld [vmem:[%s2462_s2 + $0x68] sm:$0xff] }
 0x596   :  { %v1151_v51 = vpop.f32.mrf.mxu1 }
 0x597   :  { %v1152_v52 = vadd.f32 %v2291_v35, %v1151_v51 }
 0x598   :  { %v2014_v53 = vpop.f32.mrf.mxu1 }
 0x599   :  { %v1158_v54 = vsel %vm326_vm2, %v1152_v52, -inf }
 0x59a   :  { %1159 = vmax.xlane.f32.xlu1 %v1158_v54 }
 0x5ab   :  { %1257 = vrot.lane.b32.xlu1 %v2308_v56, %s2146_s13 }
 0x5af   :  { %1346 = vrot.lane.b32.xlu1 %v2235_v21, %s2147_s14 }
 0x5b3   :  { %1424 = vrot.lane.b32.xlu1 %v2233_v17, %s2147_s14 }
 0x5b7   :  { %1422 = vrot.lane.b32.xlu1 %v2252_v24, %s2147_s14 }
 0x613   :  { %v1157_v55 = vpop.xlane.xlu0 %1156 }
 0x614   :  { %v1161_v57 = vsub.f32 %v1074_v46, %v1157_v55 }
 0x616   :  { %v1163_v59 = vmul.f32 1.442695, %v1161_v57 }
 0x618   :  { %2083 = vpow2.f32 %v1163_v59 }
 0x623   :  { %v1160_v60 = vpop.xlane.xlu1 %1159 }
 0x624   :  { %v1162_v17 = vsub.f32 %v1152_v52, %v1160_v60  ;;  %v1868_v52 = vld [vmem:[%s2462_s2 + $0x60] sm:$0xff] }
 0x625   :  { %v2084_v61 = vpop.eup %2083 }
 0x626   :  { %v1167_v62 = vsel %vm326_vm2, %v2084_v61, 0.0  ;;  %v1165_v21 = vmul.f32 1.442695, %v1162_v17 }
 0x627   :  { %1168 = vadd.xlane.f32.xlu0 %v1167_v62  ;;  %v1258_v63 = vpop.permute.xlu1 %1257 }
 0x628   :  { %2021 = vmatpush3.msra.mxu1 %v1258_v63  ;;  %2085 = vpow2.f32 %v1165_v21 }
 0x629   :  { %2030 = vmatprep.subr.mxu1 %v2143_v12 }
 0x62b   :  { %v1347_v5 = vpop.permute.xlu1 %1346 }
 0x62f   :  { %v1425_v8 = vpop.permute.xlu1 %1424 }
 0x633   :  { %v1423_v10 = vpop.permute.xlu1 %1422 }
 0x635   :  { %v2086_v24 = vpop.eup %2085 }
 0x636   :  { %v1170_v0 = vsel %vm326_vm2, %v2086_v24, 0.0 }
 0x63d   :  { %1181 = vrot.lane.b32.xlu0 %v2310_v58, %s2146_s13 }
 0x65c   :  { %1171 = vadd.xlane.f32.xlu0 %v1170_v0 }
 0x672   :  { %1344 = vrot.lane.b32.xlu0 %v2239_v22, %s2147_s14 }
 0x6b0   :  { %v1169_v1 = vpop.xlane.xlu0 %1168 }
 0x6b1   :  { %2087 = vrcp.f32 %v1169_v1 }
 0x6b4   :  { %v1182_v2 = vpop.permute.xlu0 %1181 }
 0x6b5   :  { %2016 = vmatpush3.msra.mxu0 %v1182_v2 }
 0x6b6   :  { %2025 = vmatprep.subr.mxu0 %v2143_v12 }
 0x6be   :  { %v2088_v3 = vpop.eup %2087 }
 0x6bf   :  { %v1174_v4 = vmul.f32 %v2088_v3, %v2084_v61 }
 0x6c1   :  { %1178 = vst.msk [vmem:[#allocation5 + $0x10] sm:$0xff] %vm326_vm2, %v1174_v4  ;;  %2018 = vmatmul.mubr.msk.f32.vlgmr.msra.gmra.mxu0 %vm326_vm2, %v1174_v4 }
 0x6c2   :  { %2026 = vmatpush3.xpose.msk.msra.mxu0 %vm326_vm2, %v1347_v5  ;;  %2027 = vmatprep.mubr.msk.f32.mxu0 %vm2144_vm1, %v2143_v12 }
 0x6c3   :  { %2035 = vmatprep.subr.mxu0 %v2143_v12 }
 0x6e5   :  { %v1172_v22 = vpop.xlane.xlu0 %1171 }
 0x6e6   :  { %2089 = vrcp.f32 %v1172_v22 }
 0x6e9   :  { %v1345_v6 = vpop.permute.xlu0 %1344 }
 0x6ea   :  { %2028 = vmatmul.mubr.msk.f32.vlgmr.msra.gmra.mxu0 %vm326_vm2, %v1345_v6 }
 0x6eb   :  { %2037 = vmatprep.mubr.msk.f32.mxu0 %vm2144_vm1, %v2143_v12 }
 0x6f3   :  { %v2090_v7 = vpop.eup %2089 }
 0x6f4   :  { %v1176_v9 = vmul.f32 %v2090_v7, %v2086_v24 }
 0x6f6   :  { %1180 = vst.msk [vmem:[#allocation5 + $0x30] sm:$0xff] %vm326_vm2, %v1176_v9  ;;  %2023 = vmatmul.mubr.msk.f32.vlgmr.msra.gmra.mxu1 %vm326_vm2, %v1176_v9 }
 0x6f7   :  { %2031 = vmatpush3.xpose.msk.msra.mxu1 %vm326_vm2, %v1425_v8  ;;  %2032 = vmatprep.mubr.msk.f32.mxu1 %vm2144_vm1, %v2143_v12 }
 0x6f8   :  { %2040 = vmatprep.subr.mxu1 %v2143_v12 }
 0x6fa   :  { %2033 = vmatmul.mubr.msk.f32.vlgmr.msra.gmra.mxu1 %vm326_vm2, %v1423_v10 }
 0x6fb   :  { %2042 = vmatprep.mubr.msk.f32.mxu1 %vm2144_vm1, %v2143_v12 }
 0x781   :  { %v1253_v11 = vpop.f32.mrf.mxu0 }
 0x783   :  { %v2019_v13 = vpop.f32.mrf.mxu0 }
 0x7aa   :  { %v1418_v14 = vpop.f32.mrf.mxu0 }
 0x7ab   :  { %v1419_v15 = vadd.f32 %v2285_v31, %v1418_v14 }
 0x7ac   :  { %v2029_v16 = vpop.f32.mrf.mxu0 }
 0x7ad   :  { %v1500_v18 = vsel %vm326_vm2, %v1419_v15, -inf }
 0x7ae   :  { %1501 = vmax.xlane.f32.xlu0 %v1500_v18 }
 0x7b6   :  { %v1329_v19 = vpop.f32.mrf.mxu1 }
 0x7b8   :  { %v2024_v20 = vpop.f32.mrf.mxu1 }
 0x7ba   :  { %v1496_v23 = vpop.f32.mrf.mxu1 }
 0x7bb   :  { %v1497_v25 = vadd.f32 %v2291_v35, %v1496_v23 }
 0x7bc   :  { %v2034_v26 = vpop.f32.mrf.mxu1 }
 0x7bd   :  { %v1503_v27 = vsel %vm326_vm2, %v1497_v25, -inf }
 0x7be   :  { %1504 = vmax.xlane.f32.xlu1 %v1503_v27 }
 0x7cf   :  { %1602 = vrot.lane.b32.xlu1 %v2308_v56, %s2147_s14 }
 0x7d3   :  { %990 = vrot.lane.b32.xlu1 %v2371_v43, %s2148_s15 }
 0x7d7   :  { %992 = vrot.lane.b32.xlu1 %v2375_v49, %s2148_s15 }
 0x7db   :  { %1337 = vrot.lane.b32.xlu1 %v1329_v19, %s2149_s16 }
 0x837   :  { %v1502_v12 = vpop.xlane.xlu0 %1501 }
 0x838   :  { %v1506_v31 = vsub.f32 %v1419_v15, %v1502_v12 }
 0x83a   :  { %v1508_v28 = vmul.f32 1.442695, %v1506_v31 }
 0x83c   :  { %2091 = vpow2.f32 %v1508_v28 }
 0x847   :  { %v1505_v35 = vpop.xlane.xlu1 %1504 }
 0x848   :  { %v1507_v29 = vsub.f32 %v1497_v25, %v1505_v35 }
 0x849   :  { %v2092_v30 = vpop.eup %2091 }
 0x84a   :  { %v1510_v32 = vmul.f32 1.442695, %v1507_v29  ;;  %v1512_v33 = vsel %vm326_vm2, %v2092_v30, 0.0 }
 0x84b   :  { %1513 = vadd.xlane.f32.xlu0 %v1512_v33  ;;  %v1603_v56 = vpop.permute.xlu1 %1602 }
 0x84c   :  { %2093 = vpow2.f32 %v1510_v32  ;;  %2041 = vmatpush3.msra.mxu1 %v1603_v56 }
 0x84f   :  { %v991_v34 = vpop.permute.xlu1 %990 }
 0x850   :  { %997 = vst.msk [vmem:[#allocation2] sm:$0xff] %vm996_vm3, %v991_v34 }
 0x853   :  { %v993_v36 = vpop.permute.xlu1 %992 }
 0x854   :  { %998 = vst.msk [vmem:[#allocation2 + $0x8] sm:$0xff] %vm996_vm3, %v993_v36 }
 0x857   :  { %v1338_v37 = vpop.permute.xlu1 %1337 }
 0x858   :  { %1343 = vst.msk [vmem:[#allocation2 + $0x8] sm:$0xff] %vm1341_vm4, %v1338_v37 }
 0x859   :  { %v2094_v38 = vpop.eup %2093 }
 0x85a   :  { %v1515_v39 = vsel %vm326_vm2, %v2094_v38, 0.0 }
 0x85b   :  { %1516 = vadd.xlane.f32.xlu0 %v1515_v39 }
 0x871   :  { %1526 = vrot.lane.b32.xlu0 %v2310_v58, %s2147_s14  ;;  %v1871_v58 = vld [vmem:[%s2462_s2 + $0x78] sm:$0xff]  ;;  %s1804_s2 = sshll.u32 %s2151_s26, 4  ;;  %s1805_s2 = int_to_ptr.vmem [resolvable:$true] %s1804_s2 }
 0x872   :  { %s2099_s27 = scalar_lea.vmem %s1805_s2, 1024  ;;  %p2104_p1 = scmp.lt.s32.totalorder %s1805_s2, %s1805_s2 }
 0x873   :  { %p2100_p0 = scmp.ne.s32.totalorder %s1805_s2, %s2099_s27  ;;  %p2105_p2 = scmp.lt.s32.totalorder %s2099_s27, %s2099_s27 }
 0x875   :  { %1335 = vrot.lane.b32.xlu0 %v1253_v11, %s2149_s16  ;;  %p2106_p3 = por %p2105_p2, %p2104_p1 }
 0x877   :  { %p2107_p4 = pnand %p2106_p3, %p2100_p0 }
 0x8d4   :  { %v1514_v40 = vpop.xlane.xlu0 %1513 }
 0x8d5   :  { %2095 = vrcp.f32 %v1514_v40 }
 0x8e2   :  { %v2096_v41 = vpop.eup %2095 }
 0x8e3   :  { %v1519_v42 = vmul.f32 %v2096_v41, %v2092_v30 }
 0x8e4   :  { %v1517_v43 = vpop.xlane.xlu0 %1516 }
 0x8e5   :  { %2097 = vrcp.f32 %v1517_v43  ;;  %1523 = vst.msk [vmem:[#allocation5 + $0x18] sm:$0xff] %vm326_vm2, %v1519_v42 }
 0x8e8   :  { %v1527_v44 = vpop.permute.xlu0 %1526 }
 0x8e9   :  { %2036 = vmatpush3.msra.mxu0 %v1527_v44 }
 0x8ea   :  { %2038 = vmatmul.mubr.msk.f32.vlgmr.msra.gmra.mxu0 %vm326_vm2, %v1519_v42  ;;  %2045 = vmatprep.subr.mxu0 %v1871_v58 }
 0x8eb   :  { %2046 = vmatpush3.msra.mxu0 %v1871_v58 }
 0x8ec   :  { %v1336_v45 = vpop.permute.xlu0 %1335  ;;  %2047 = vmatprep.subr.mxu0 %v1870_v48 }
 0x8ed   :  { %1342 = vst.msk [vmem:[#allocation2] sm:$0xff] %vm1341_vm4, %v1336_v45  ;;  %2048 = vmatpush3.msra.mxu0 %v1870_v48 }
 0x8ee   :  { %2049 = vmatprep.subr.mxu0 %v1869_v50 }
 0x8ef   :  { %2050 = vmatpush3.msra.mxu0 %v1869_v50 }
 0x8f0   :  { %2051 = vmatprep.subr.mxu0 %v1868_v52 }
 0x8f1   :  { %2052 = vmatpush3.msra.mxu0 %v1868_v52 }
 0x8f2   :  { %v2098_v46 = vpop.eup %2097 }
 0x8f3   :  { %v1521_v47 = vmul.f32 %v2098_v46, %v2094_v38 }
 0x8f5   :  { %1525 = vst.msk [vmem:[#allocation5 + $0x38] sm:$0xff] %vm326_vm2, %v1521_v47  ;;  %2043 = vmatmul.mubr.msk.f32.vlgmr.msra.gmra.mxu1 %vm326_vm2, %v1521_v47 }
 0x9aa   :  { %v1598_v49 = vpop.f32.mrf.mxu0 }
 0x9ab   :  { %1680 = vrot.lane.b32.xlu0 %v1598_v49, %s2150_s21 }
 0x9ac   :  { %v2039_v51 = vpop.f32.mrf.mxu0 }
 0x9b5   :  { %v1674_v53 = vpop.f32.mrf.mxu1 }
 0x9b6   :  { %1682 = vrot.lane.b32.xlu1 %v1674_v53, %s2150_s21 }
 0x9b7   :  { %v2044_v54 = vpop.f32.mrf.mxu1 }
 0xa1d   :  { %v1681_v55 = vpop.permute.xlu0 %1680 }
 0xa1e   :  { %1687 = vst.msk [vmem:[#allocation2] sm:$0xff] %vm1686_vm5, %v1681_v55 }
 0xa25   :  { %v1689_v57 = vld [vmem:[#allocation2] sm:$0xff] }
 0xa26   :  { %2053 = vmatprep.mubr.msk.f32.mxu0 %vm40_vm0, %v1689_v57 }
 0xa28   :  { %v1683_v59 = vpop.permute.xlu1 %1682 }
 0xa29   :  { %1688 = vst.msk [vmem:[#allocation2 + $0x8] sm:$0xff] %vm1686_vm5, %v1683_v59 }
 0xa30   :  { %v1690_v60 = vld [vmem:[#allocation2 + $0x8] sm:$0xff] }
 0xa31   :  { %2054 = vmatmul.mubr.msk.f32.vlgmr.msra.gmra.mxu0 %vm40_vm0, %v1690_v60 }
 0xa32   :  { %2110 = shalt.err (!%p2107_p4)
}
 0xa33   :  { %s2152_s28 = smov 128   ;;  %v1873_v61 = vld [vmem:[%s2463_s3 + $0x3] ss:$0 sm:$0xff]  ;;  %s2153_s8 = smov [#allocation3]  }
 0xa34   :  { %1810 = dma.vmem_to_hbm [thread:$0]  %s1805_s2, 1024, %s2465_s5, [#allocation6], %s2152_s28, %s2152_s28, %s2148_s15  }
 0xa35   :  { %s1792_s9 = sshll.u32 %s2153_s8, 4  ;;  %s1793_s9 = int_to_ptr.vmem [resolvable:$true] %s1792_s9 }
 0xa36   :  { %s2119_s10 = scalar_lea.vmem %s1793_s9, 256  ;;  %p2124_p6 = scmp.lt.s32.totalorder %s1793_s9, %s1793_s9 }
 0xa37   :  { %p2120_p5 = scmp.ne.s32.totalorder %s1793_s9, %s2119_s10  ;;  %p2125_p7 = scmp.lt.s32.totalorder %s2119_s10, %s2119_s10 }
 0xa39   :  { %p2126_p8 = por %p2125_p7, %p2124_p6 }
 0xa3b   :  { %p2127_p9 = pnand %p2126_p8, %p2120_p5 }
 0xaf1   :  { %v2055_v62 = vpop.f32.mrf.mxu0 }
 0xaf2   :  { %v1782_v63 = vadd.f32 %v2055_v62, %v1873_v61 }
 0xaf3   :  { %v1776_v17 = vpop.f32.mrf.mxu0 }
 0xaf4   :  { %1786 = vst.msk [vmem:[#allocation3 + $0x8] sm:$0xff] %vm40_vm0, %v1782_v63  ;;  %v1777_v21 = vadd.f32 %v1873_v61, %v1776_v17 }
 0xaf6   :  { %1785 = vst.msk [vmem:[#allocation3] sm:$0xff] %vm40_vm0, %v1777_v21 }
 0xaf7   :  { %2130 = shalt.err (!%p2127_p9)
}
 0xaf8   :  { %1798 = dma.vmem_to_hbm [thread:$0]  %s1793_s9, 256, %s2464_s4, [#allocation4], %s2152_s28, %s2152_s28, %s2148_s15  }
 0xaf9   :  { %2139 = dma.done.wait [#allocation4], 256  }
 0xafa   :  { %2140 = vsyncadd [#allocation4], 4294967040 }
 0xafb   :  { %2141 = dma.done.wait [#allocation6], 1024  }
 0xafc   :  { %2142 = vsyncadd [#allocation6], 4294966272 }
 0xafd   :  { %1817 = vsyncpa [#allocation4], 1 }
 0xafe   :  { %1818 = vsyncpa [#allocation6], 1 }

</bundles_post_ra>
